<compile_context>
chip_gen: v7x
topology: tpu7x:2x2x1
jax: 0.10.0
libtpu: 0.0.40
codegen_flags: <defaults>
</compile_context>

<pallas_src>
import math
from functools import partial

import jax
import jax.numpy as jnp
from jax.experimental import pallas as pl
from jax.experimental.pallas import tpu as pltpu


def _round_up(v, m):
    return ((v + m - 1) // m) * m


def _lr_forward_kernel(n_valid, tiles_per_core, tn,
                       x_ref, w_ref, b_ref, y_ref, a_ref,
                       ys_ref, yspre_ref, stats_ref):
    c = pl.program_id(0)      # (megacore) parallel slice of N
    t = pl.program_id(1)      # sequential tile within the slice

    @pl.when(t == 0)
    def _init():
        stats_ref[...] = jnp.zeros_like(stats_ref)

    x = x_ref[...]            # (D, TN) f32, batch on lanes
    w = w_ref[...]            # (D, 1)  f32
    b = b_ref[0]              # scalar bias from SMEM
    y = y_ref[...]            # (1, TN)
    A = a_ref[...]            # (1, TN)

    # Linear layer on the VPU: broadcast weight over lanes, sublane-reduce D.
    z = jnp.sum(x * w, axis=0, keepdims=True) + b          # logits (1, TN)
    ys = jax.nn.sigmoid(z)
    hat = (ys >= 0.5).astype(jnp.float32)

    ys_ref[...] = ys
    yspre_ref[...] = z

    # Validity mask for padded batch columns.
    col = (c * tiles_per_core + t) * tn + jax.lax.broadcasted_iota(
        jnp.int32, (1, tn), 1)
    valid = (col < n_valid).astype(jnp.float32)

    # BCE from logits (numerically-stable softplus form).
    # TODO(synk): torch.nn.BCELoss clamps log terms at -100; this form only
    # differs when |z| > 100, which never happens with xavier*0.1 init.
    loss = jnp.maximum(z, 0.0) - z * y + jnp.log(1.0 + jnp.exp(-jnp.abs(z)))
    correct = (hat == y).astype(jnp.float32)
    sig10 = jax.nn.sigmoid(10.0 * z)

    # Fused raw reductions (derived sums like sum(1-A) are done in the wrapper).
    A_m = A * valid
    s_loss = jnp.sum(loss * valid)
    s_corr = jnp.sum(correct * valid)
    s_a = jnp.sum(A_m)
    s_sig10 = jnp.sum(sig10 * valid)
    s_sig10a = jnp.sum(sig10 * A_m)
    s_hat = jnp.sum(hat * valid)
    s_hata = jnp.sum(hat * A_m)
    s_cnt = jnp.sum(valid)

    partial_sums = jnp.stack(
        [s_loss, s_corr, s_a, s_sig10, s_sig10a, s_hat, s_hata, s_cnt])
    stats_ref[...] += partial_sums.reshape(1, 1, 8)


def lr_pytorch_forward(x, y, A, weight, bias):
    """Forward of LR_PyTorch (disparity_type='DP').

    x: (N, D) f32, y/A: (N, 1) f32, weight: (1, D) f32, bias: scalar f32.
    Returns (task_loss, acc, 0, pred_dis, disparity, ys, ys_pre).
    """
    n, d = x.shape

    # ---- tile selection: biggest lane tile within a conservative VMEM budget
    bytes_per_col = (d + 4) * 4 * 2                    # x,y,A,ys,z double-buffered
    tn = (8 * 1024 * 1024 // bytes_per_col) // 128 * 128
    tn = max(128, min(32768, tn))
    tn = min(tn, _round_up(n, 128))

    n_tiles = -(-n // tn)
    num_cores = 2 if n_tiles >= 2 else 1               # v7x megacore split
    tiles_per_core = -(-n_tiles // num_cores)
    n_pad = num_cores * tiles_per_core * tn

    # ---- lane-dense layout: batch N on the lane axis (padded to tile grid)
    x_t = jnp.pad(x.astype(jnp.float32).T, ((0, 0), (0, n_pad - n)))
    y_r = jnp.pad(y.astype(jnp.float32).reshape(1, n), ((0, 0), (0, n_pad - n)))
    a_r = jnp.pad(A.astype(jnp.float32).reshape(1, n), ((0, 0), (0, n_pad - n)))
    w_col = weight.astype(jnp.float32).reshape(d, 1)
    b_sm = jnp.asarray(bias, jnp.float32).reshape(1)

    col_map = lambda c, t: (0, c * tiles_per_core + t)
    kernel = partial(_lr_forward_kernel, n, tiles_per_core, tn)

    ys_r, yspre_r, stats = pl.pallas_call(
        kernel,
        out_shape=(
            jax.ShapeDtypeStruct((1, n_pad), jnp.float32),          # ys
            jax.ShapeDtypeStruct((1, n_pad), jnp.float32),          # ys_pre
            jax.ShapeDtypeStruct((num_cores, 1, 8), jnp.float32),   # raw sums
        ),
        grid_spec=pltpu.PrefetchScalarGridSpec(
            num_scalar_prefetch=0,
            grid=(num_cores, tiles_per_core),
            in_specs=[
                pl.BlockSpec((d, tn), col_map),                         # x^T
                pl.BlockSpec((d, 1), lambda c, t: (0, 0)),              # weight
                pl.BlockSpec(memory_space=pltpu.MemorySpace.SMEM),      # bias
                pl.BlockSpec((1, tn), col_map),                         # y
                pl.BlockSpec((1, tn), col_map),                         # A
            ],
            out_specs=(
                pl.BlockSpec((1, tn), col_map),                         # ys
                pl.BlockSpec((1, tn), col_map),                         # ys_pre
                pl.BlockSpec((1, 1, 8), lambda c, t: (c, 0, 0)),        # stats
            ),
        ),
        compiler_params=pltpu.CompilerParams(
            dimension_semantics=("parallel", "arbitrary"),
            vmem_limit_bytes=32 * 1024 * 1024,
        ),
    )(x_t, w_col, b_sm, y_r, a_r)

    # ---- finalize from raw sums (combinable across tiles / cores) ----------
    s = jnp.sum(stats, axis=0).reshape(8)
    s_loss, s_corr, s_a, s_sig10, s_sig10a, s_hat, s_hata, s_cnt = (
        s[0], s[1], s[2], s[3], s[4], s[5], s[6], s[7])
    task_loss = s_loss / s_cnt
    acc = s_corr / s_cnt
    s_na = s_cnt - s_a
    # TODO(synk): like the PyTorch module, a single-group batch (sum(A)==0 or
    # sum(1-A)==0) yields inf/nan here; the torch try/except fallback and the
    # 'Eoppo' disparity branch are not implemented (module defaults to 'DP').
    pred_dis = s_sig10a / s_a - (s_sig10 - s_sig10a) / s_na
    disparity = s_hata / s_a - (s_hat - s_hata) / s_na

    ys = ys_r[:, :n].reshape(n, 1)
    ys_pre = yspre_r[:, :n].reshape(n, 1)
    # matches the PyTorch return tuple (3rd element is a literal 0)
    return task_loss, acc, 0, pred_dis, disparity, ys, ys_pre


def _reference(x, y, A, weight, bias):
    """Pure-JAX reference (no MXU dot, to keep f32-exact comparison)."""
    z = jnp.sum(x * weight, axis=-1, keepdims=True) + bias
    ys = jax.nn.sigmoid(z)
    hat = (ys >= 0.5).astype(jnp.float32)
    loss = jnp.mean(jnp.maximum(z, 0.0) - z * y + jnp.log1p(jnp.exp(-jnp.abs(z))))
    acc = jnp.mean((hat == y).astype(jnp.float32))
    sig10 = jax.nn.sigmoid(10.0 * z)
    sa, sna = jnp.sum(A), jnp.sum(1.0 - A)
    pred_dis = jnp.sum(sig10 * A) / sa - jnp.sum(sig10 * (1.0 - A)) / sna
    disp = jnp.sum(hat * A) / sa - jnp.sum(hat * (1.0 - A)) / sna
    return loss, acc, pred_dis, disp, ys, z


if __name__ == "__main__":
    # small shapes implied by the module: LR over tabular features
    N, D = 8, 16          # batch, input_dim ; output_dim=2 -> 1 in the module

    key = jax.random.PRNGKey(0)
    kx, kw, kb, ky = jax.random.split(key, 4)

    x = jax.random.normal(kx, (N, D), dtype=jnp.float32)

    # deterministic param init mimicking xavier_uniform_ * 0.1 (fan_in=D, fan_out=1)
    gain_bound = math.sqrt(6.0 / (D + 1))
    weight = (jax.random.uniform(kw, (1, D), jnp.float32,
                                 minval=-gain_bound, maxval=gain_bound) * 0.1)
    b_bound = 1.0 / math.sqrt(D)
    bias = jax.random.uniform(kb, (), jnp.float32,
                              minval=-b_bound, maxval=b_bound)

    # binary labels and sensitive attribute (both groups present -> no div by 0)
    y = (jax.random.uniform(ky, (N, 1)) > 0.5).astype(jnp.float32)
    A = jnp.array([[1.], [0.], [1.], [0.], [1.], [1.], [0.], [0.]],
                  dtype=jnp.float32)

    out = lr_pytorch_forward(x, y, A, weight, bias)
    jax.block_until_ready(out[0])
    jax.block_until_ready(out[5])
    jax.block_until_ready(out[6])

    ref = _reference(x, y, A, weight, bias)
    ok = (
        bool(jnp.allclose(out[0], ref[0], atol=1e-5, rtol=1e-4)) and
        bool(jnp.allclose(out[1], ref[1], atol=1e-6)) and
        bool(jnp.allclose(out[3], ref[2], atol=1e-5, rtol=1e-4)) and
        bool(jnp.allclose(out[4], ref[3], atol=1e-5, rtol=1e-4)) and
        bool(jnp.allclose(out[5], ref[4], atol=1e-5, rtol=1e-4)) and
        bool(jnp.allclose(out[6], ref[5], atol=1e-5, rtol=1e-4))
    )
    if not ok:
        raise SystemExit("numerical mismatch vs reference")
    print("KERNEL_OK")
</pallas_src>

<mosaic_0001>
module attributes {stable_mosaic.version = 11 : i64} {
  func.func @_lr_forward_kernel(%arg0: i32, %arg1: i32, %arg2: memref<16x128xf32, #tpu.memory_space<vmem>>, %arg3: memref<16x1xf32, #tpu.memory_space<vmem>>, %arg4: memref<1xf32, #tpu.memory_space<smem>>, %arg5: memref<1x128xf32, #tpu.memory_space<vmem>>, %arg6: memref<1x128xf32, #tpu.memory_space<vmem>>, %arg7: memref<1x128xf32, #tpu.memory_space<vmem>>, %arg8: memref<1x128xf32, #tpu.memory_space<vmem>>, %arg9: memref<1x1x8xf32, #tpu.memory_space<vmem>>) attributes {dimension_semantics = [#tpu.dimension_semantics<parallel>, #tpu.dimension_semantics<arbitrary>], iteration_bounds = array<i64: 1, 1>, scalar_prefetch = 0 : i64, scratch_operands = 0 : i64, tpu.core_type = #tpu.core_type<tc>, window_params = [{transform_indices = @transform_0, window_bounds = array<i64: 16, 128>}, {pipeline_mode = #tpu.pipeline_mode<synchronous>, transform_indices = @transform_1, window_bounds = array<i64: 16, 1>}, {transform_indices = @transform_2, window_bounds = array<i64: 1>}, {transform_indices = @transform_3, window_bounds = array<i64: 1, 128>}, {transform_indices = @transform_4, window_bounds = array<i64: 1, 128>}, {transform_indices = @transform_5, window_bounds = array<i64: 1, 128>}, {transform_indices = @transform_6, window_bounds = array<i64: 1, 128>}, {transform_indices = @transform_7, window_bounds = array<i64: 1, 1, 8>}]} {
    %c0_i32 = arith.constant 0 : i32
    %0 = arith.cmpi eq, %arg1, %c0_i32 : i32
    %1 = arith.extui %0 : i1 to i32
    %c0_i32_0 = arith.constant 0 : i32
    %2 = arith.cmpi ne, %1, %c0_i32_0 : i32
    scf.if %2 {
      %cst_34 = arith.constant 0.000000e+00 : f32
      %109 = vector.broadcast %cst_34 : f32 to vector<1x1x8xf32>
      %c0_35 = arith.constant 0 : index
      %c0_36 = arith.constant 0 : index
      %c0_37 = arith.constant 0 : index
      %110 = vector.load %arg9[%c0_35, %c0_36, %c0_37] : memref<1x1x8xf32, #tpu.memory_space<vmem>>, vector<1x1x8xf32>
      tpu.vector_store %arg9[%c0_35, %c0_36, %c0_37], %109 {strides = array<i32>} : memref<1x1x8xf32, #tpu.memory_space<vmem>>, vector<1x1x8xf32>,
    } else {
    }
    %c0 = arith.constant 0 : index
    %c0_1 = arith.constant 0 : index
    %3 = vector.load %arg2[%c0, %c0_1] : memref<16x128xf32, #tpu.memory_space<vmem>>, vector<16x128xf32>
    %c0_2 = arith.constant 0 : index
    %c0_3 = arith.constant 0 : index
    %4 = vector.load %arg3[%c0_2, %c0_3] : memref<16x1xf32, #tpu.memory_space<vmem>>, vector<16x1xf32>
    %c0_4 = arith.constant 0 : index
    %5 = memref.load %arg4[%c0_4] : memref<1xf32, #tpu.memory_space<smem>>
    %c0_5 = arith.constant 0 : index
    %c0_6 = arith.constant 0 : index
    %6 = vector.load %arg5[%c0_5, %c0_6] : memref<1x128xf32, #tpu.memory_space<vmem>>, vector<1x128xf32>
    %c0_7 = arith.constant 0 : index
    %c0_8 = arith.constant 0 : index
    %7 = vector.load %arg6[%c0_7, %c0_8] : memref<1x128xf32, #tpu.memory_space<vmem>>, vector<1x128xf32>
    %8 = vector.broadcast %4 : vector<16x1xf32> to vector<16x128xf32>
    %9 = arith.mulf %3, %8 : vector<16x128xf32>
    %cst = arith.constant dense<0.000000e+00> : vector<128xf32>
    %10 = vector.multi_reduction <add>, %9, %cst [0] : vector<16x128xf32> to vector<128xf32>
    %11 = vector.shape_cast %10 : vector<128xf32> to vector<1x128xf32>
    %12 = vector.broadcast %5 : f32 to vector<1x128xf32>
    %13 = arith.addf %11, %12 : vector<1x128xf32>
    %14 = arith.negf %13 : vector<1x128xf32>
    %15 = math.exp %14 : vector<1x128xf32>
    %cst_9 = arith.constant 1.000000e+00 : f32
    %16 = vector.broadcast %cst_9 : f32 to vector<1x128xf32>
    %17 = arith.addf %16, %15 : vector<1x128xf32>
    %18 = arith.divf %16, %17 : vector<1x128xf32>
    %cst_10 = arith.constant 5.000000e-01 : f32
    %19 = vector.broadcast %cst_10 : f32 to vector<1x128xf32>
    %20 = arith.cmpf oge, %18, %19 : vector<1x128xf32>
    %21 = arith.extui %20 : vector<1x128xi1> to vector<1x128xi32>
    %22 = arith.sitofp %21 : vector<1x128xi32> to vector<1x128xf32>
    %c0_11 = arith.constant 0 : index
    %c0_12 = arith.constant 0 : index
    %23 = vector.load %arg7[%c0_11, %c0_12] : memref<1x128xf32, #tpu.memory_space<vmem>>, vector<1x128xf32>
    tpu.vector_store %arg7[%c0_11, %c0_12], %18 {strides = array<i32>} : memref<1x128xf32, #tpu.memory_space<vmem>>, vector<1x128xf32>,
    %c0_13 = arith.constant 0 : index
    %c0_14 = arith.constant 0 : index
    %24 = vector.load %arg8[%c0_13, %c0_14] : memref<1x128xf32, #tpu.memory_space<vmem>>, vector<1x128xf32>
    tpu.vector_store %arg8[%c0_13, %c0_14], %13 {strides = array<i32>} : memref<1x128xf32, #tpu.memory_space<vmem>>, vector<1x128xf32>,
    %c1_i32 = arith.constant 1 : i32
    %25 = arith.muli %arg0, %c1_i32 : i32
    %26 = arith.addi %25, %arg1 : i32
    %c128_i32 = arith.constant 128 : i32
    %27 = arith.muli %26, %c128_i32 : i32
    %28 = tpu.iota {dimensions = array<i32: 1>} : vector<1x128xi32>
    %29 = vector.broadcast %27 : i32 to vector<1x128xi32>
    %30 = arith.addi %29, %28 : vector<1x128xi32>
    %c8_i32 = arith.constant 8 : i32
    %31 = vector.broadcast %c8_i32 : i32 to vector<1x128xi32>
    %32 = arith.cmpi slt, %30, %31 : vector<1x128xi32>
    %33 = arith.extui %32 : vector<1x128xi1> to vector<1x128xi32>
    %34 = arith.sitofp %33 : vector<1x128xi32> to vector<1x128xf32>
    %cst_15 = arith.constant 0.000000e+00 : f32
    %35 = vector.broadcast %cst_15 : f32 to vector<1x128xf32>
    %36 = arith.maximumf %13, %35 : vector<1x128xf32>
    %37 = arith.mulf %13, %6 : vector<1x128xf32>
    %38 = arith.subf %36, %37 : vector<1x128xf32>
    %39 = math.absf %13 : vector<1x128xf32>
    %cst_16 = arith.constant 0.000000e+00 : f32
    %40 = vector.broadcast %cst_16 : f32 to vector<1x128xf32>
    %41 = arith.subf %40, %39 : vector<1x128xf32>
    %42 = math.exp %41 : vector<1x128xf32>
    %cst_17 = arith.constant 1.000000e+00 : f32
    %43 = vector.broadcast %cst_17 : f32 to vector<1x128xf32>
    %44 = arith.addf %43, %42 : vector<1x128xf32>
    %45 = math.log %44 : vector<1x128xf32>
    %46 = arith.addf %38, %45 : vector<1x128xf32>
    %47 = arith.cmpf oeq, %22, %6 : vector<1x128xf32>
    %48 = arith.extui %47 : vector<1x128xi1> to vector<1x128xi32>
    %49 = arith.sitofp %48 : vector<1x128xi32> to vector<1x128xf32>
    %cst_18 = arith.constant 1.000000e+01 : f32
    %50 = vector.broadcast %cst_18 : f32 to vector<1x128xf32>
    %51 = arith.mulf %50, %13 : vector<1x128xf32>
    %52 = arith.negf %51 : vector<1x128xf32>
    %53 = math.exp %52 : vector<1x128xf32>
    %cst_19 = arith.constant 1.000000e+00 : f32
    %54 = vector.broadcast %cst_19 : f32 to vector<1x128xf32>
    %55 = arith.addf %54, %53 : vector<1x128xf32>
    %56 = arith.divf %54, %55 : vector<1x128xf32>
    %57 = arith.mulf %7, %34 : vector<1x128xf32>
    %58 = arith.mulf %46, %34 : vector<1x128xf32>
    %59 = vector.shape_cast %58 : vector<1x128xf32> to vector<1x1x128xf32>
    %cst_20 = arith.constant dense<0.000000e+00> : vector<1xf32>
    %60 = vector.multi_reduction <add>, %59, %cst_20 [1, 2] : vector<1x1x128xf32> to vector<1xf32>
    %61 = vector.shape_cast %60 : vector<1xf32> to vector<1x1x1xf32>
    %62 = vector.extract %61[0, 0, 0] : f32 from vector<1x1x1xf32>
    %63 = arith.mulf %49, %34 : vector<1x128xf32>
    %64 = vector.shape_cast %63 : vector<1x128xf32> to vector<1x1x128xf32>
    %cst_21 = arith.constant dense<0.000000e+00> : vector<1xf32>
    %65 = vector.multi_reduction <add>, %64, %cst_21 [1, 2] : vector<1x1x128xf32> to vector<1xf32>
    %66 = vector.shape_cast %65 : vector<1xf32> to vector<1x1x1xf32>
    %67 = vector.extract %66[0, 0, 0] : f32 from vector<1x1x1xf32>
    %68 = vector.shape_cast %57 : vector<1x128xf32> to vector<1x1x128xf32>
    %cst_22 = arith.constant dense<0.000000e+00> : vector<1xf32>
    %69 = vector.multi_reduction <add>, %68, %cst_22 [1, 2] : vector<1x1x128xf32> to vector<1xf32>
    %70 = vector.shape_cast %69 : vector<1xf32> to vector<1x1x1xf32>
    %71 = vector.extract %70[0, 0, 0] : f32 from vector<1x1x1xf32>
    %72 = arith.mulf %56, %34 : vector<1x128xf32>
    %73 = vector.shape_cast %72 : vector<1x128xf32> to vector<1x1x128xf32>
    %cst_23 = arith.constant dense<0.000000e+00> : vector<1xf32>
    %74 = vector.multi_reduction <add>, %73, %cst_23 [1, 2] : vector<1x1x128xf32> to vector<1xf32>
    %75 = vector.shape_cast %74 : vector<1xf32> to vector<1x1x1xf32>
    %76 = vector.extract %75[0, 0, 0] : f32 from vector<1x1x1xf32>
    %77 = arith.mulf %56, %57 : vector<1x128xf32>
    %78 = vector.shape_cast %77 : vector<1x128xf32> to vector<1x1x128xf32>
    %cst_24 = arith.constant dense<0.000000e+00> : vector<1xf32>
    %79 = vector.multi_reduction <add>, %78, %cst_24 [1, 2] : vector<1x1x128xf32> to vector<1xf32>
    %80 = vector.shape_cast %79 : vector<1xf32> to vector<1x1x1xf32>
    %81 = vector.extract %80[0, 0, 0] : f32 from vector<1x1x1xf32>
    %82 = arith.mulf %22, %34 : vector<1x128xf32>
    %83 = vector.shape_cast %82 : vector<1x128xf32> to vector<1x1x128xf32>
    %cst_25 = arith.constant dense<0.000000e+00> : vector<1xf32>
    %84 = vector.multi_reduction <add>, %83, %cst_25 [1, 2] : vector<1x1x128xf32> to vector<1xf32>
    %85 = vector.shape_cast %84 : vector<1xf32> to vector<1x1x1xf32>
    %86 = vector.extract %85[0, 0, 0] : f32 from vector<1x1x1xf32>
    %87 = arith.mulf %22, %57 : vector<1x128xf32>
    %88 = vector.shape_cast %87 : vector<1x128xf32> to vector<1x1x128xf32>
    %cst_26 = arith.constant dense<0.000000e+00> : vector<1xf32>
    %89 = vector.multi_reduction <add>, %88, %cst_26 [1, 2] : vector<1x1x128xf32> to vector<1xf32>
    %90 = vector.shape_cast %89 : vector<1xf32> to vector<1x1x1xf32>
    %91 = vector.extract %90[0, 0, 0] : f32 from vector<1x1x1xf32>
    %92 = vector.shape_cast %34 : vector<1x128xf32> to vector<1x1x128xf32>
    %cst_27 = arith.constant dense<0.000000e+00> : vector<1xf32>
    %93 = vector.multi_reduction <add>, %92, %cst_27 [1, 2] : vector<1x1x128xf32> to vector<1xf32>
    %94 = vector.shape_cast %93 : vector<1xf32> to vector<1x1x1xf32>
    %95 = vector.extract %94[0, 0, 0] : f32 from vector<1x1x1xf32>
    %96 = vector.broadcast %62 : f32 to vector<1xf32>
    %97 = vector.broadcast %67 : f32 to vector<1xf32>
    %98 = vector.broadcast %71 : f32 to vector<1xf32>
    %99 = vector.broadcast %76 : f32 to vector<1xf32>
    %100 = vector.broadcast %81 : f32 to vector<1xf32>
    %101 = vector.broadcast %86 : f32 to vector<1xf32>
    %102 = vector.broadcast %91 : f32 to vector<1xf32>
    %103 = vector.broadcast %95 : f32 to vector<1xf32>
    %104 = tpu.concatenate %96, %97, %98, %99, %100, %101, %102, %103 in 0 : vector<1xf32>, vector<1xf32>, vector<1xf32>, vector<1xf32>, vector<1xf32>, vector<1xf32>, vector<1xf32>, vector<1xf32> -> vector<8xf32>
    %c0_28 = arith.constant 0 : index
    %c0_29 = arith.constant 0 : index
    %c0_30 = arith.constant 0 : index
    %105 = vector.load %arg9[%c0_28, %c0_29, %c0_30] : memref<1x1x8xf32, #tpu.memory_space<vmem>>, vector<1x1x8xf32>
    %106 = vector.shape_cast %104 : vector<8xf32> to vector<1x1x8xf32>
    %107 = arith.addf %105, %106 : vector<1x1x8xf32>
    %c0_31 = arith.constant 0 : index
    %c0_32 = arith.constant 0 : index
    %c0_33 = arith.constant 0 : index
    %108 = vector.load %arg9[%c0_31, %c0_32, %c0_33] : memref<1x1x8xf32, #tpu.memory_space<vmem>>, vector<1x1x8xf32>
    tpu.vector_store %arg9[%c0_31, %c0_32, %c0_33], %107 {strides = array<i32>} : memref<1x1x8xf32, #tpu.memory_space<vmem>>, vector<1x1x8xf32>,
    return
  }
  func.func @transform_0(%arg0: i32, %arg1: i32) -> (i32, i32) {
    %c1_i32 = arith.constant 1 : i32
    %0 = arith.muli %arg0, %c1_i32 : i32
    %1 = arith.addi %0, %arg1 : i32
    %c0_i32 = arith.constant 0 : i32
    %c0_i32_0 = arith.constant 0 : i32
    return %c0_i32, %1 : i32, i32
  }
  func.func @transform_1(%arg0: i32, %arg1: i32) -> (i32, i32) {
    %c0_i32 = arith.constant 0 : i32
    %c0_i32_0 = arith.constant 0 : i32
    %c0_i32_1 = arith.constant 0 : i32
    return %c0_i32, %c0_i32_0 : i32, i32
  }
  func.func @transform_2(%arg0: i32, %arg1: i32) -> i32 {
    %c0_i32 = arith.constant 0 : i32
    %c0_i32_0 = arith.constant 0 : i32
    return %c0_i32 : i32
  }
  func.func @transform_3(%arg0: i32, %arg1: i32) -> (i32, i32) {
    %c1_i32 = arith.constant 1 : i32
    %0 = arith.muli %arg0, %c1_i32 : i32
    %1 = arith.addi %0, %arg1 : i32
    %c0_i32 = arith.constant 0 : i32
    %c0_i32_0 = arith.constant 0 : i32
    return %c0_i32, %1 : i32, i32
  }
  func.func @transform_4(%arg0: i32, %arg1: i32) -> (i32, i32) {
    %c1_i32 = arith.constant 1 : i32
    %0 = arith.muli %arg0, %c1_i32 : i32
    %1 = arith.addi %0, %arg1 : i32
    %c0_i32 = arith.constant 0 : i32
    %c0_i32_0 = arith.constant 0 : i32
    return %c0_i32, %1 : i32, i32
  }
  func.func @transform_5(%arg0: i32, %arg1: i32) -> (i32, i32) {
    %c1_i32 = arith.constant 1 : i32
    %0 = arith.muli %arg0, %c1_i32 : i32
    %1 = arith.addi %0, %arg1 : i32
    %c0_i32 = arith.constant 0 : i32
    %c0_i32_0 = arith.constant 0 : i32
    return %c0_i32, %1 : i32, i32
  }
  func.func @transform_6(%arg0: i32, %arg1: i32) -> (i32, i32) {
    %c1_i32 = arith.constant 1 : i32
    %0 = arith.muli %arg0, %c1_i32 : i32
    %1 = arith.addi %0, %arg1 : i32
    %c0_i32 = arith.constant 0 : i32
    %c0_i32_0 = arith.constant 0 : i32
    return %c0_i32, %1 : i32, i32
  }
  func.func @transform_7(%arg0: i32, %arg1: i32) -> (i32, i32, i32) {
    %c0_i32 = arith.constant 0 : i32
    %c0_i32_0 = arith.constant 0 : i32
    %c0_i32_1 = arith.constant 0 : i32
    return %arg0, %c0_i32, %c0_i32_0 : i32, i32, i32
  }
}

</mosaic_0001>

<bundles_post_ra>
// kernel: tpu_custom_call.1
= control target key start
LH: loop header
LB: loop body
LE: loop exit
PB: predicated region body
PF: predicated region fallthrough
CT: control target
= control target key end

     0   :  { %14 = vsyncpa [#allocation4], 0  ;;  %s576_s0 = inlined_call_operand.vmem [shape: f32[16,128], index: 0, kind: input, shape index: {}]   ;;  %s577_s1 = inlined_call_operand.vmem [shape: f32[16,1], index: 1, kind: input, shape index: {}]   ;;  %s578_s2 = inlined_call_operand.<no memory space> [shape: f32[1], index: 2, kind: input, shape index: {}]   ;;  %s579_s3 = inlined_call_operand.vmem [shape: f32[1,128], index: 3, kind: input, shape index: {}]   ;;  %s580_s4 = inlined_call_operand.vmem [shape: f32[1,128], index: 4, kind: input, shape index: {}]   ;;  %s581_s5 = inlined_call_operand.hbm [shape: f32[1,128], index: 5, kind: output, shape index: {0}]   ;;  %s582_s6 = inlined_call_operand.hbm [shape: f32[1,128], index: 6, kind: output, shape index: {1}]   ;;  %s583_s7 = inlined_call_operand.hbm [shape: f32[1,1,8], index: 7, kind: output, shape index: {2}]  }
   0x1   :  { %v81_v0 = vld [vmem:[%s577_s1] sm:$0xff] }
   0x2   :  { %15 = vsyncpa [#allocation6], 0  ;;  %v439_v1 = vmov 0   ;;  %v82_v2 = vld [vmem:[%s577_s1 + $0x8] sm:$0xff]  ;;  %v120_v3 = vlaneseq  ;;  %v440_v5 = vmov 0.0   ;;  %vm150_vm1 = vcmask 1040384  }
   0x3   :  { %356 = vset.pattern.permute.xlu0 %v439_v1  ;;  %v85_v7 = vld [vmem:[%s580_s4] sm:$0x1]  ;;  %v80_v12 = vld [vmem:[%s576_s0 + $0x8] sm:$0xff]  ;;  %v105_v22 = vstv %s578_s2  ;;  %vm77_vm4 = vcmask 57344   ;;  %s442_s12 = smov [#allocation3]  }
   0x4   :  { %88 = vperm.xlu0 %356, %v81_v0   ;;  %v121_v4 = vand.u32 127, %v120_v3  ;;  %v79_v11 = vld [vmem:[%s576_s0] sm:$0xff]  ;;  %78 = vst.msk [vmem:[#allocation7] sm:$0x1] %vm77_vm4, %v440_v5  ;;  %s280_s13 = sshll.u32 %s442_s12, 4  ;;  %s281_s13 = int_to_ptr.vmem [resolvable:$true] %s280_s13 }
   0x5   :  { %v84_v41 = vld [vmem:[%s579_s3] sm:$0x1]  ;;  %s441_s3 = smov [#allocation5]  }
   0x6   :  { %vm124_vm0 = vcmp.lt.s32.totalorder %v121_v4, 8  ;;  %s293_s11 = sshll.u32 %s441_s3, 4  ;;  %s294_s11 = int_to_ptr.vmem [resolvable:$true] %s293_s11 }
   0x7   :  { %v492_v6 = vsel %vm124_vm0, 1.0, %v440_v5  ;;  %s369_s14 = scalar_lea.vmem %s294_s11, 16  ;;  %s373_s15 = scalar_lea.vmem %s294_s11, 32 }
   0x8   :  { %93 = vperm.xlu0 %356, %v82_v2   ;;  %v498_v8 = vmul.f32 %v492_v6, %v85_v7  ;;  %v226_v60 = vsel %vm150_vm1, %v492_v6, 0.0  ;;  %p370_p0 = scmp.ne.s32.totalorder %s294_s11, %s369_s14  ;;  %p374_p1 = scmp.lt.s32.totalorder %s294_s11, %s294_s11 }
   0x9   :  { %p375_p2 = scmp.lt.s32.totalorder %s373_s15, %s369_s14 }
   0xa   :  { %v172_v9 = vsel %vm150_vm1, %v498_v8, 0.0 }
   0xb   :  { %p376_p3 = por %p375_p2, %p374_p1 }
   0xd   :  { %p377_p4 = pnand %p376_p3, %p370_p0 }
  0x27   :  { %173 = vadd.xlane.f32.xlu0 %v172_v9 }
  0x83   :  { %v89_v10 = vpop.permute.xlu0 %88 }
  0x84   :  { %v96_v14 = vmul.f32 %v89_v10, %v79_v11 }
  0x87   :  { %v94_v13 = vpop.permute.xlu0 %93 }
  0x88   :  { %v97_v15 = vmul.f32 %v94_v13, %v80_v12 }
  0x8a   :  { %v98_v16 = vadd.f32 %v97_v15, %v96_v14 }
  0x8c   :  { %v99_v17 = vrot.slane %v98_v16, 4 }
  0x8e   :  { %v100_v18 = vadd.f32 %v99_v17, %v98_v16 }
  0x90   :  { %v101_v19 = vrot.slane %v100_v18, 2 }
  0x92   :  { %v102_v20 = vadd.f32 %v101_v19, %v100_v18 }
  0x94   :  { %v103_v21 = vrot.slane %v102_v20, 1 }
  0x96   :  { %v104_v23 = vadd.f32 %v103_v21, %v102_v20 }
  0x98   :  { %v106_v24 = vadd.f32 %v105_v22, %v104_v23 }
  0x9a   :  { %117 = vst [vmem:[#allocation5] sm:$0x1] %v106_v24  ;;  %v334_v25 = vmul.f32 -10.0, %v106_v24  ;;  %v330_v26 = vmul.f32 -1.442695, %v106_v24  ;;  %v128_v45 = vmul.f32 %v106_v24, %v84_v41  ;;  %v127_v46 = vmax.f32 %v106_v24, 0.0 }
  0x9b   :  { %v130_v27 = vand.u32 2147483647, %v106_v24 }
  0x9c   :  { %v143_v28 = vmul.f32 1.442695, %v334_v25  ;;  %357 = vpow2.f32 %v330_v26  ;;  %v129_v51 = vsub.f32 %v127_v46, %v128_v45 }
  0x9d   :  { %v131_v29 = vsub.f32 0.0, %v130_v27 }
  0x9e   :  { %359 = vpow2.f32 %v143_v28 }
  0x9f   :  { %v132_v30 = vmul.f32 1.442695, %v131_v29 }
  0xa1   :  { %361 = vpow2.f32 %v132_v30 }
  0xa6   :  { %v358_v31 = vpop.eup %357 }
  0xa7   :  { %v110_v32 = vadd.f32 1.0, %v358_v31 }
  0xa8   :  { %v360_v33 = vpop.eup %359 }
  0xa9   :  { %v145_v34 = vadd.f32 1.0, %v360_v33  ;;  %363 = vrcp.f32 %v110_v32 }
  0xab   :  { %v362_v35 = vpop.eup %361  ;;  %365 = vrcp.f32 %v145_v34 }
  0xac   :  { %v134_v36 = vadd.f32 1.0, %v362_v35 }
  0xae   :  { %367 = vlog2.f32 %v134_v36 }
  0xb3   :  { %v364_v37 = vpop.eup %363 }
  0xb4   :  { %vm113_vm2 = vcmp.ge.f32.partialorder %v364_v37, 0.5  ;;  %116 = vst [vmem:[#allocation3] sm:$0x1] %v364_v37 }
  0xb5   :  { %v366_v38 = vpop.eup %365  ;;  %v331_v40 = vsel %vm113_vm2, 1.0, %v440_v5 }
  0xb6   :  { %v182_v39 = vmul.f32 %v366_v38, %v492_v6  ;;  %v193_v43 = vmul.f32 %v366_v38, %v498_v8  ;;  %vm138_vm3 = vcmp.eq.f32.partialorder %v331_v40, %v84_v41  ;;  %v204_v48 = vmul.f32 %v492_v6, %v331_v40 }
  0xb7   :  { %v333_v50 = vsel %vm138_vm3, 1.0, %v440_v5  ;;  %v215_v58 = vmul.f32 %v331_v40, %v498_v8 }
  0xb8   :  { %v183_v42 = vsel %vm150_vm1, %v182_v39, 0.0  ;;  %v368_v44 = vpop.eup %367  ;;  %v194_v47 = vsel %vm150_vm1, %v193_v43, 0.0  ;;  %v205_v52 = vsel %vm150_vm1, %v204_v48, 0.0  ;;  %v161_v53 = vmul.f32 %v333_v50, %v492_v6 }
  0xb9   :  { %184 = vadd.xlane.f32.xlu1 %v183_v42  ;;  %v136_v49 = vmul.f32 0.6931472, %v368_v44  ;;  %v216_v59 = vsel %vm150_vm1, %v215_v58, 0.0 }
  0xba   :  { %v162_v55 = vsel %vm150_vm1, %v161_v53, 0.0 }
  0xbb   :  { %v137_v54 = vadd.f32 %v136_v49, %v129_v51 }
  0xbd   :  { %195 = vadd.xlane.f32.xlu1 %v194_v47  ;;  %v149_v56 = vmul.f32 %v492_v6, %v137_v54 }
  0xbf   :  { %v151_v57 = vsel %vm150_vm1, %v149_v56, 0.0 }
  0xc1   :  { %206 = vadd.xlane.f32.xlu1 %v205_v52 }
  0xc5   :  { %163 = vadd.xlane.f32.xlu1 %v162_v55 }
  0xc9   :  { %152 = vadd.xlane.f32.xlu1 %v151_v57 }
  0xcd   :  { %217 = vadd.xlane.f32.xlu1 %v216_v59 }
  0xd1   :  { %227 = vadd.xlane.f32.xlu1 %v226_v60 }
  0xd2   :  { %380 = shalt.err (!%p377_p4)
}
  0xd3   :  { %s381_s18 = scalar_lea.hbm %s582_s6, 16 }
  0xd4   :  { %p382_p5 = scmp.ne.s32.totalorder %s582_s6, %s381_s18  ;;  %p385_p6 = scmp.lt.u32.totalorder %s381_s18, %s582_s6 }
  0xd6   :  { %p387_p7 = pnand %p385_p6, %p382_p5 }
  0xd8   :  { %390 = shalt.err (!%p387_p7)
}
  0xd9   :  { %296 = dma.vmem_to_hbm [thread:$0]  %s294_s11, 16, %s582_s6, [#allocation6]  }
  0xda   :  { %s391_s25 = scalar_lea.vmem %s281_s13, 16  ;;  %s395_s26 = scalar_lea.vmem %s281_s13, 32 }
  0xdb   :  { %p392_p8 = scmp.ne.s32.totalorder %s281_s13, %s391_s25  ;;  %p396_p9 = scmp.lt.s32.totalorder %s281_s13, %s281_s13 }
  0xdc   :  { %p397_p10 = scmp.lt.s32.totalorder %s395_s26, %s391_s25 }
  0xde   :  { %p398_p11 = por %p397_p10, %p396_p9 }
  0xe0   :  { %p399_p12 = pnand %p398_p11, %p392_p8 }
  0xe2   :  { %402 = shalt.err (!%p399_p12)
}
  0xe3   :  { %s403_s29 = scalar_lea.hbm %s581_s5, 16 }
  0xe4   :  { %p404_p13 = scmp.ne.s32.totalorder %s581_s5, %s403_s29  ;;  %p407_p0 = scmp.lt.u32.totalorder %s403_s29, %s581_s5 }
  0xe6   :  { %p409_p1 = pnand %p407_p0, %p404_p13 }
  0xe8   :  { %412 = shalt.err (!%p409_p1)
}
  0xe9   :  { %283 = dma.vmem_to_hbm [thread:$0]  %s281_s13, 16, %s581_s5, [#allocation4]   ;;  %v174_v63 = vpop.xlane.xlu0 %173  ;;  %vm246_vm5 = vcmp.lt.s32.totalorder %v120_v3, 1  ;;  %vm249_vm6 = vcmp.lt.s32.totalorder %v120_v3, 2  ;;  %vm252_vm7 = vcmp.lt.s32.totalorder %v120_v3, 3  ;;  %vm255_vm8 = vcmp.lt.s32.totalorder %v120_v3, 4 }
  0xea   :  { %v175_v1 = vrot.slane %v174_v63, 4  ;;  %vm258_vm9 = vcmp.lt.s32.totalorder %v120_v3, 5  ;;  %vm261_vm10 = vcmp.lt.s32.totalorder %v120_v3, 6  ;;  %vm264_vm11 = vcmp.lt.s32.totalorder %v120_v3, 7  ;;  %s443_s14 = smov [#allocation7]  }
  0xeb   :  { %s303_s15 = sshll.u32 %s443_s14, 4  ;;  %s304_s15 = int_to_ptr.vmem [resolvable:$true] %s303_s15 }
  0xec   :  { %v176_v8 = vadd.f32 %v175_v1, %v174_v63  ;;  %s413_s16 = scalar_lea.vmem %s304_s15, 16  ;;  %s417_s17 = scalar_lea.vmem %s304_s15, 32 }
  0xed   :  { %p414_p2 = scmp.ne.s32.totalorder %s304_s15, %s413_s16  ;;  %p418_p3 = scmp.lt.s32.totalorder %s304_s15, %s304_s15 }
  0xee   :  { %v177_v15 = vrot.slane %v176_v8, 2  ;;  %p419_p4 = scmp.lt.s32.totalorder %s417_s17, %s413_s16 }
  0xf0   :  { %v178_v23 = vadd.f32 %v177_v15, %v176_v8  ;;  %p420_p5 = por %p419_p4, %p418_p3 }
  0xf2   :  { %v179_v36 = vrot.slane %v178_v23, 1  ;;  %p421_p6 = pnand %p420_p5, %p414_p2 }
  0xf4   :  { %v180_v45 = vadd.f32 %v179_v36, %v178_v23 }
 0x146   :  { %v185_v61 = vpop.xlane.xlu1 %184 }
 0x147   :  { %v186_v2 = vrot.slane %v185_v61, 4 }
 0x149   :  { %v187_v9 = vadd.f32 %v186_v2, %v185_v61  ;;  %v267_v2 = vld [vmem:[#allocation7] sm:$0x1] }
 0x14a   :  { %v196_v62 = vpop.xlane.xlu1 %195 }
 0x14b   :  { %v197_v4 = vrot.slane %v196_v62, 4  ;;  %v188_v17 = vrot.slane %v187_v9, 2 }
 0x14d   :  { %v198_v10 = vadd.f32 %v197_v4, %v196_v62  ;;  %v189_v26 = vadd.f32 %v188_v17, %v187_v9 }
 0x14e   :  { %v207_v0 = vpop.xlane.xlu1 %206 }
 0x14f   :  { %v208_v5 = vrot.slane %v207_v0, 4  ;;  %v199_v18 = vrot.slane %v198_v10, 2  ;;  %v190_v37 = vrot.slane %v189_v26, 1 }
 0x151   :  { %v209_v12 = vadd.f32 %v208_v5, %v207_v0  ;;  %v200_v29 = vadd.f32 %v199_v18, %v198_v10  ;;  %v191_v47 = vadd.f32 %v190_v37, %v189_v26 }
 0x152   :  { %v164_v6 = vpop.xlane.xlu1 %163 }
 0x153   :  { %v165_v7 = vrot.slane %v164_v6, 4  ;;  %v210_v20 = vrot.slane %v209_v12, 2  ;;  %v201_v40 = vrot.slane %v200_v29, 1 }
 0x155   :  { %v166_v11 = vadd.f32 %v165_v7, %v164_v6  ;;  %v211_v32 = vadd.f32 %v210_v20, %v209_v12  ;;  %v202_v49 = vadd.f32 %v201_v40, %v200_v29 }
 0x156   :  { %v153_v13 = vpop.xlane.xlu1 %152 }
 0x157   :  { %v167_v14 = vrot.slane %v166_v11, 2  ;;  %v154_v16 = vrot.slane %v153_v13, 4  ;;  %v212_v43 = vrot.slane %v211_v32, 1 }
 0x159   :  { %v155_v19 = vadd.f32 %v154_v16, %v153_v13  ;;  %v168_v22 = vadd.f32 %v167_v14, %v166_v11  ;;  %v213_v51 = vadd.f32 %v212_v43, %v211_v32 }
 0x15a   :  { %v218_v21 = vpop.xlane.xlu1 %217 }
 0x15b   :  { %v156_v24 = vrot.slane %v155_v19, 2  ;;  %v219_v25 = vrot.slane %v218_v21, 4  ;;  %v169_v31 = vrot.slane %v168_v22, 1 }
 0x15d   :  { %v220_v27 = vadd.f32 %v219_v25, %v218_v21  ;;  %v157_v28 = vadd.f32 %v156_v24, %v155_v19  ;;  %v170_v42 = vadd.f32 %v169_v31, %v168_v22 }
 0x15e   :  { %v228_v30 = vpop.xlane.xlu1 %227 }
 0x15f   :  { %v221_v33 = vrot.slane %v220_v27, 2  ;;  %v229_v34 = vrot.slane %v228_v30, 4  ;;  %v158_v35 = vrot.slane %v157_v28, 1 }
 0x161   :  { %v230_v38 = vadd.f32 %v229_v34, %v228_v30  ;;  %v159_v39 = vadd.f32 %v158_v35, %v157_v28  ;;  %v222_v41 = vadd.f32 %v221_v33, %v220_v27 }
 0x163   :  { %v231_v44 = vrot.slane %v230_v38, 2  ;;  %335 = vpush %v159_v39  ;;  %v223_v46 = vrot.slane %v222_v41, 1 }
 0x164   :  { %337 = vpush %v170_v42 }
 0x165   :  { %v232_v48 = vadd.f32 %v231_v44, %v230_v38  ;;  %339 = vpush %v180_v45  ;;  %v224_v50 = vadd.f32 %v223_v46, %v222_v41 }
 0x166   :  { %341 = vpush %v191_v47 }
 0x167   :  { %343 = vpush %v202_v49  ;;  %v233_v52 = vrot.slane %v232_v48, 1 }
 0x168   :  { %345 = vpush %v213_v51 }
 0x169   :  { %347 = vpush %v224_v50  ;;  %v234_v53 = vadd.f32 %v233_v52, %v232_v48 }
 0x16b   :  { %349 = vpush %v234_v53 }
 0x194   :  { %s336_s5 = spop %335 }
 0x195   :  { %v236_v54 = vstv %s336_s5  ;;  %s338_s10 = spop %337 }
 0x196   :  { %v237_v55 = vstv %s338_s10  ;;  %s340_s0 = spop %339 }
 0x197   :  { %v248_v56 = vsel %vm246_vm5, %v236_v54, %v237_v55  ;;  %v238_v57 = vstv %s340_s0  ;;  %s342_s2 = spop %341 }
 0x198   :  { %v251_v58 = vsel %vm249_vm6, %v248_v56, %v238_v57  ;;  %v239_v59 = vstv %s342_s2  ;;  %s344_s3 = spop %343 }
 0x199   :  { %v254_v60 = vsel %vm252_vm7, %v251_v58, %v239_v59  ;;  %v240_v61 = vstv %s344_s3  ;;  %s346_s11 = spop %345 }
 0x19a   :  { %v257_v62 = vsel %vm255_vm8, %v254_v60, %v240_v61  ;;  %v241_v63 = vstv %s346_s11  ;;  %s348_s12 = spop %347 }
 0x19b   :  { %v260_v0 = vsel %vm258_vm9, %v257_v62, %v241_v63  ;;  %v242_v1 = vstv %s348_s12 }
 0x19c   :  { %s350_s13 = spop %349  ;;  %v263_v4 = vsel %vm261_vm10, %v260_v0, %v242_v1 }
 0x19d   :  { %v243_v5 = vstv %s350_s13 }
 0x19e   :  { %v266_v6 = vsel %vm264_vm11, %v263_v4, %v243_v5 }
 0x19f   :  { %v268_v7 = vadd.f32 %v267_v2, %v266_v6 }
 0x1a1   :  { %270 = vst.msk [vmem:[#allocation7] sm:$0x1] %vm77_vm4, %v268_v7 }
 0x1a2   :  { %424 = shalt.err (!%p421_p6)
}
 0x1a3   :  { %s425_s20 = scalar_lea.hbm %s583_s7, 16 }
 0x1a4   :  { %p426_p7 = scmp.ne.s32.totalorder %s583_s7, %s425_s20  ;;  %p429_p8 = scmp.lt.u32.totalorder %s425_s20, %s583_s7 }
 0x1a6   :  { %p431_p9 = pnand %p429_p8, %p426_p7 }
 0x1a8   :  { %434 = shalt.err (!%p431_p9)
}
 0x1a9   :  { %306 = dma.vmem_to_hbm [thread:$0]  %s304_s15, 16, %s583_s7, [#allocation6]  }
 0x1aa   :  { %435 = dma.done.wait [#allocation4], 16  }
 0x1ab   :  { %436 = vsyncadd [#allocation4], 4294967280 }
 0x1ac   :  { %437 = dma.done.wait [#allocation6], 32  }
 0x1ad   :  { %438 = vsyncadd [#allocation6], 4294967264 }
 0x1ae   :  { %316 = vsyncpa [#allocation4], 1 }
 0x1af   :  { %317 = vsyncpa [#allocation6], 1 }

</bundles_post_ra>
